<compile_context>
chip_gen: v7x
topology: tpu7x:2x2x1
jax: 0.10.0
libtpu: 0.0.40
codegen_flags: <defaults>
</compile_context>

<pallas_src>
import functools

import jax
import jax.numpy as jnp
from jax.experimental import pallas as pl
from jax.experimental.pallas import tpu as pltpu

# Per-buffer byte budget for tile sizing.  Double-buffered in+out -> ~4x this
# in VMEM, which stays under the 16 MiB scoped-VMEM default on v5e and leaves
# plenty of headroom on v6e/v7x.
_TILE_BYTE_BUDGET = 2 * 1024 * 1024
_MAX_TL = 4096  # lane-axis cap (128-aligned); long contiguous HBM bursts.


def _round_down(v: int, m: int) -> int:
    return (v // m) * m


def _copy_kernel(x_ref, o_ref):
    # Input and output windows are identical (TM, TL) tiles over the kept
    # prefix of the length axis -> straight copy, no in-kernel slicing.
    o_ref[...] = x_ref[...]


def _slice_kernel(x_ref, o_ref, *, out_len: int):
    # Fallback for tiny L_out (< 128): input block carries the full length,
    # static prefix slice along lanes inside the kernel.
    o_ref[...] = x_ref[:, :out_len]


def chomp1d(x: jax.Array, chomp_size: int) -> jax.Array:
    """Pallas equivalent of Chomp1d.forward: x[:, :, :-chomp_size]."""
    assert chomp_size > 0
    N, C, L = x.shape
    L_out = L - chomp_size
    assert L_out > 0

    rows = N * C
    x2 = x.reshape(rows, L)  # merge leading dims (contiguous, free)
    dtype_bytes = jnp.dtype(x.dtype).itemsize

    # Pure HBM->HBM copy: zero flops, read + write of the kept prefix only.
    cost = pl.CostEstimate(
        flops=0,
        transcendentals=0,
        bytes_accessed=2 * rows * L_out * dtype_bytes,
    )

    if L_out >= 128:
        # ---- Lane-dense main path -------------------------------------
        # Grow the lane axis first (contiguous HBM bursts), 128-aligned.
        TL = min(_round_down(L_out, 128), _MAX_TL)
        # Then grow rows until the per-buffer byte budget is met.
        elems_budget = max(_TILE_BYTE_BUDGET // dtype_bytes, 8 * 128)
        tm_target = max(elems_budget // TL, 8)
        if rows <= tm_target:
            TM = rows  # full row extent -> always a legal block dim
        else:
            TM = max(8, _round_down(tm_target, 8))

        # v7x megacore: make sure there are >=2 grid steps to shard across
        # the two TensorCores when the tensor isn't trivially small.
        if pl.cdiv(rows, TM) * pl.cdiv(L_out, TL) < 2:
            if rows >= 16:
                TM = max(8, _round_down((rows + 1) // 2, 8))
            elif TL >= 256:
                TL = max(128, _round_down(TL // 2, 128))

        grid = (pl.cdiv(rows, TM), pl.cdiv(L_out, TL))
        out2 = pl.pallas_call(
            _copy_kernel,
            out_shape=jax.ShapeDtypeStruct((rows, L_out), x.dtype),
            grid_spec=pltpu.PrefetchScalarGridSpec(
                num_scalar_prefetch=0,
                grid=grid,
                # Input window == output window: the trailing chomp_size
                # elements of each row are never read from HBM.
                in_specs=[pl.BlockSpec((TM, TL), lambda i, j: (i, j))],
                out_specs=pl.BlockSpec((TM, TL), lambda i, j: (i, j)),
            ),
            compiler_params=pltpu.CompilerParams(
                dimension_semantics=("parallel", "parallel"),
            ),
            cost_estimate=cost,
        )(x2)
    else:
        # ---- Tiny-length fallback (L_out < 128) ------------------------
        # One lane tile covering the full length; grow TM with the byte
        # budget so large N*C still moves ~2 MiB per step.
        tm_target = max(_TILE_BYTE_BUDGET // max(L * dtype_bytes, 1), 8)
        if rows <= tm_target:
            TM = rows
        else:
            TM = max(8, _round_down(tm_target, 8))
        # v7x megacore: >=2 steps when there are enough rows to split.
        if pl.cdiv(rows, TM) < 2 and rows >= 16:
            TM = max(8, _round_down((rows + 1) // 2, 8))

        kernel = functools.partial(_slice_kernel, out_len=L_out)
        grid = (pl.cdiv(rows, TM),)
        out2 = pl.pallas_call(
            kernel,
            out_shape=jax.ShapeDtypeStruct((rows, L_out), x.dtype),
            grid_spec=pltpu.PrefetchScalarGridSpec(
                num_scalar_prefetch=0,
                grid=grid,
                in_specs=[pl.BlockSpec((TM, L), lambda i: (i, 0))],
                out_specs=pl.BlockSpec((TM, L_out), lambda i: (i, 0)),
            ),
            compiler_params=pltpu.CompilerParams(
                dimension_semantics=("parallel",),
            ),
            cost_estimate=cost,
        )(x2)

    return out2.reshape(N, C, L_out)


if __name__ == "__main__":
    key = jax.random.PRNGKey(0)
    chomp_size = 3

    # Case 1: small TCN-style activation (exercises the tiny-length fallback).
    N, C, L = 2, 4, 16
    x_small = jax.random.normal(key, (N, C, L), dtype=jnp.float32)
    out_small = jax.block_until_ready(chomp1d(x_small, chomp_size))
    ref_small = x_small[:, :, :-chomp_size]
    assert out_small.shape == (N, C, L - chomp_size), out_small.shape
    assert out_small.dtype == x_small.dtype
    assert jnp.array_equal(out_small, ref_small), "small-case mismatch"

    # Case 2: longer sequence (exercises the lane-dense tiled copy path,
    # including the ragged remainder lane tile and the >=2-step grid).
    N2, C2, L2 = 2, 8, 303
    x_big = jax.random.normal(jax.random.PRNGKey(0), (N2, C2, L2),
                              dtype=jnp.float32)
    out_big = jax.block_until_ready(chomp1d(x_big, chomp_size))
    ref_big = x_big[:, :, :-chomp_size]
    assert out_big.shape == (N2, C2, L2 - chomp_size), out_big.shape
    assert out_big.dtype == x_big.dtype
    assert jnp.array_equal(out_big, ref_big), "large-case mismatch"

    print("KERNEL_OK")
</pallas_src>

<mosaic_0001>
module attributes {stable_mosaic.version = 11 : i64} {
  func.func @_slice_kernel(%arg0: i32, %arg1: memref<8x16xf32, #tpu.memory_space<vmem>>, %arg2: memref<8x13xf32, #tpu.memory_space<vmem>>) attributes {dimension_semantics = [#tpu.dimension_semantics<parallel>], iteration_bounds = array<i64: 1>, scalar_prefetch = 0 : i64, scratch_operands = 0 : i64, tpu.core_type = #tpu.core_type<tc>, window_params = [{transform_indices = @transform_0, window_bounds = array<i64: 8, 16>}, {transform_indices = @transform_1, window_bounds = array<i64: 8, 13>}]} {
    %c0 = arith.constant 0 : index
    %c0_0 = arith.constant 0 : index
    %0 = vector.load %arg1[%c0, %c0_0] : memref<8x16xf32, #tpu.memory_space<vmem>>, vector<8x13xf32>
    %c0_1 = arith.constant 0 : index
    %c0_2 = arith.constant 0 : index
    %1 = vector.load %arg2[%c0_1, %c0_2] : memref<8x13xf32, #tpu.memory_space<vmem>>, vector<8x13xf32>
    tpu.vector_store %arg2[%c0_1, %c0_2], %0 {strides = array<i32>} : memref<8x13xf32, #tpu.memory_space<vmem>>, vector<8x13xf32>,
    return
  }
  func.func @transform_0(%arg0: i32) -> (i32, i32) {
    %c0_i32 = arith.constant 0 : i32
    %c0_i32_0 = arith.constant 0 : i32
    return %arg0, %c0_i32 : i32, i32
  }
  func.func @transform_1(%arg0: i32) -> (i32, i32) {
    %c0_i32 = arith.constant 0 : i32
    %c0_i32_0 = arith.constant 0 : i32
    return %arg0, %c0_i32 : i32, i32
  }
}

</mosaic_0001>

<bundles_post_ra>
// kernel: tpu_custom_call.1
= control target key start
LH: loop header
LB: loop body
LE: loop exit
PB: predicated region body
PF: predicated region fallthrough
CT: control target
= control target key end

     0   :  { %6 = vsyncpa [#allocation3], 0  ;;  %s125_s0 = inlined_call_operand.hbm [shape: f32[8,16], index: 0, kind: input, shape index: {}]   ;;  %s126_s1 = inlined_call_operand.hbm [shape: f32[8,13], index: 1, kind: output, shape index: {}]  }
   0x1   :  { %7 = vsyncpa [#allocation4], 0  ;;  %s89_s6 = smov [#allocation2]   ;;  %s41_s10 = scalar_lea.hbm %s125_s0, 128 }
   0x2   :  { %s14_s7 = sshll.u32 %s89_s6, 4  ;;  %p42_p0 = scmp.ne.s32.totalorder %s125_s0, %s41_s10  ;;  %s15_s7 = int_to_ptr.vmem [resolvable:$true] %s14_s7 }
   0x3   :  { %p45_p1 = scmp.lt.u32.totalorder %s41_s10, %s125_s0 }
   0x5   :  { %p47_p2 = pnand %p45_p1, %p42_p0 }
   0x7   :  { %50 = shalt.err (!%p47_p2)
}
   0x8   :  { %s51_s15 = scalar_lea.vmem %s15_s7, 128  ;;  %p56_p4 = scmp.lt.s32.totalorder %s15_s7, %s15_s7 }
   0x9   :  { %p52_p3 = scmp.ne.s32.totalorder %s15_s7, %s51_s15  ;;  %p57_p5 = scmp.lt.s32.totalorder %s51_s15, %s51_s15 }
   0xb   :  { %p58_p6 = por %p57_p5, %p56_p4 }
   0xd   :  { %p59_p7 = pnand %p58_p6, %p52_p3 }
   0xf   :  { %62 = shalt.err (!%p59_p7)
}
  0x10   :  { %17 = dma.hbm_to_vmem [thread:$0]  %s125_s0, 128, %s15_s7, [#allocation3]  }
  0x11   :  { %85 = dma.done.wait [#allocation3], 128  }
  0x12   :  { %86 = vsyncadd [#allocation3], 4294967168  ;;  %s90_s18 = smov [#allocation5]   ;;  %vm22_vm0 = vcmask 105472   ;;  %v21_v0 = vld [vmem:[#allocation2] sm:$0xff] }
  0x13   :  { %s30_s19 = sshll.u32 %s90_s18, 4  ;;  %23 = vst.msk [vmem:[#allocation5] sm:$0xff] %vm22_vm0, %v21_v0  ;;  %s31_s19 = int_to_ptr.vmem [resolvable:$true] %s30_s19 }
  0x14   :  { %s63_s20 = scalar_lea.vmem %s31_s19, 128  ;;  %p68_p9 = scmp.lt.s32.totalorder %s31_s19, %s31_s19 }
  0x15   :  { %p64_p8 = scmp.ne.s32.totalorder %s31_s19, %s63_s20  ;;  %p69_p10 = scmp.lt.s32.totalorder %s63_s20, %s63_s20 }
  0x17   :  { %p70_p11 = por %p69_p10, %p68_p9 }
  0x19   :  { %p71_p12 = pnand %p70_p11, %p64_p8 }
  0x1b   :  { %74 = shalt.err (!%p71_p12)
}
  0x1c   :  { %s75_s23 = scalar_lea.hbm %s126_s1, 128 }
  0x1d   :  { %p76_p13 = scmp.ne.s32.totalorder %s126_s1, %s75_s23  ;;  %p79_p0 = scmp.lt.u32.totalorder %s75_s23, %s126_s1 }
  0x1f   :  { %p81_p1 = pnand %p79_p0, %p76_p13 }
  0x21   :  { %84 = shalt.err (!%p81_p1)
}
  0x22   :  { %33 = dma.vmem_to_hbm [thread:$0]  %s31_s19, 128, %s126_s1, [#allocation4]  }
  0x23   :  { %87 = dma.done.wait [#allocation4], 128  }
  0x24   :  { %88 = vsyncadd [#allocation4], 4294967168 }
  0x25   :  { %37 = vsyncpa [#allocation3], 1 }
  0x26   :  { %38 = vsyncpa [#allocation4], 1 }

</bundles_post_ra>
